<compile_context>
chip_gen: v6e
topology: v6e:2x2x1
jax: 0.10.0
libtpu: 0.0.40
codegen_flags: <defaults>
</compile_context>

<pallas_src>
import functools

import jax
import jax.numpy as jnp
from jax.experimental import pallas as pl
from jax.experimental.pallas import tpu as pltpu

_MIB = 1024 * 1024


def _make_static_kernel(coeff):
    """Kernel with coeff folded in as a compile-time constant."""
    def kernel(x_ref, o_ref):
        x = x_ref[...]
        c = jnp.asarray(coeff, dtype=x.dtype)
        o_ref[...] = jnp.maximum(x * c, jnp.zeros((), dtype=x.dtype)).astype(o_ref.dtype)
    return kernel


def _dynamic_kernel(coeff_ref, x_ref, o_ref):
    """Kernel reading coeff from a (1,)-shaped SMEM scalar (traced coeff)."""
    x = x_ref[...]
    c = coeff_ref[0].astype(x.dtype)
    o_ref[...] = jnp.maximum(x * c, jnp.zeros((), dtype=x.dtype)).astype(o_ref.dtype)


@functools.lru_cache(maxsize=1)
def _chip_tuning():
    """Pick (block_bytes, vmem_limit_bytes) from the chip's physical VMEM."""
    try:
        vmem_phys = int(pltpu.get_tpu_info().vmem_capacity_bytes)
    except Exception:
        vmem_phys = 64 * _MIB  # most conservative assumption (v7x per-TC)
    if vmem_phys >= 128 * _MIB:
        block_bytes = 4 * _MIB   # v5e / v6e: ~85% of HBM roofline at this size
    else:
        block_bytes = 6 * _MIB   # v7x: 3.2 TB/s HBM -> bigger blocks amortize per-step cost
    # 2 in-buffers + 2 out-buffers + headroom; stay <= 32 MiB scoped on all gens.
    vmem_limit = min(32 * _MIB, 4 * block_bytes + 4 * _MIB)
    return block_bytes, vmem_limit


def _choose_lanes(n):
    """Widest lane-dense view dividing n that still leaves >= 8 rows."""
    for lanes in (2048, 1024, 512, 256, 128):
        if n % lanes == 0 and (n // lanes) >= 8:
            return lanes
    return 128


def steep_relu(x, coeff, *, donate=False, min_pallas_bytes=_MIB):
    """Elementwise relu(coeff * x); matches SteepReLU.forward."""
    orig_shape = x.shape
    dtype = x.dtype
    n = x.size
    if n == 0:
        return x
    itemsize = jnp.dtype(dtype).itemsize
    static_coeff = isinstance(coeff, (int, float))

    # ---- Fused-XLA fallback --------------------------------------------------
    #  (a) small tensors: a standalone pallas_call is pure overhead and blocks
    #      fusion with neighboring HLOs;
    #  (b) ragged sizes (numel % 128 != 0): one fused elementwise is exactly
    #      1 read + 1 write of HBM — better than any pad/concat/slice scheme.
    if (n * itemsize) < min_pallas_bytes or (n % 128) != 0:
        if static_coeff:
            c = jnp.asarray(coeff, dtype=dtype)
        else:
            c = jnp.asarray(coeff).astype(dtype)
        return jnp.maximum(c * x, jnp.zeros((), dtype=dtype)).astype(dtype)

    # ---- Pallas streaming path ----------------------------------------------
    lanes = _choose_lanes(n)
    rows = n // lanes
    x2d = x.reshape(rows, lanes)  # metadata-only for a contiguous array

    # Sublane packing multiple: 8 (f32), 16 (bf16/fp16), 32 (8-bit).
    sub = max(8, 32 // itemsize)
    block_bytes, vmem_limit = _chip_tuning()
    row_bytes = lanes * itemsize

    if rows <= sub:
        # Single full-extent block (rows dim equals the array dim, so the
        # (8,128) divisibility rule does not apply).
        tile_rows = rows
    else:
        rows_target = max(sub, (block_bytes // row_bytes) // sub * sub)
        # Guarantee >= 2 grid steps so ("parallel",) can shard across both
        # v7x TensorCores and the pipeline has something to overlap.
        half_rows = max(sub, (pl.cdiv(rows, 2) // sub) * sub)
        tile_rows = min(rows_target, half_rows, (rows // sub) * sub)

    grid = (pl.cdiv(rows, tile_rows),)
    block_spec = pl.BlockSpec((tile_rows, lanes), lambda i: (i, 0))
    out_shape = jax.ShapeDtypeStruct((rows, lanes), dtype)
    cparams = pltpu.CompilerParams(
        dimension_semantics=("parallel",),
        vmem_limit_bytes=vmem_limit,
    )
    cost = pl.CostEstimate(flops=2 * n, transcendentals=0,
                           bytes_accessed=2 * n * itemsize)

    if static_coeff:
        out2d = pl.pallas_call(
            _make_static_kernel(float(coeff)),
            out_shape=out_shape,
            grid_spec=pltpu.PrefetchScalarGridSpec(
                num_scalar_prefetch=0,
                grid=grid,
                in_specs=[block_spec],
                out_specs=block_spec,
            ),
            compiler_params=cparams,
            cost_estimate=cost,
            input_output_aliases=({0: 0} if donate else {}),
        )(x2d)
    else:
        coeff_arr = jnp.asarray(coeff, dtype=jnp.float32).reshape(1)
        out2d = pl.pallas_call(
            _dynamic_kernel,
            out_shape=out_shape,
            grid_spec=pltpu.PrefetchScalarGridSpec(
                num_scalar_prefetch=0,
                grid=grid,
                in_specs=[pl.BlockSpec(memory_space=pltpu.SMEM), block_spec],
                out_specs=block_spec,
            ),
            compiler_params=cparams,
            cost_estimate=cost,
            input_output_aliases=({1: 0} if donate else {}),
        )(coeff_arr, x2d)

    return out2d.reshape(orig_shape)


if __name__ == "__main__":
    coeff = 3.5  # static "steepness" from the module's __init__

    # 1) Module-sized activation (B=2, C=4, H=16, W=16): small -> fused jnp path.
    x_small = jax.random.normal(jax.random.PRNGKey(0), (2, 4, 16, 16), dtype=jnp.float32)
    ref_small = jnp.maximum(coeff * x_small, 0.0)
    y_small = jax.block_until_ready(steep_relu(x_small, coeff))
    assert y_small.shape == x_small.shape and y_small.dtype == x_small.dtype
    assert jnp.allclose(y_small, ref_small, atol=1e-6, rtol=1e-6)

    # 1b) Same tensor forced through the Pallas kernel (single-block path).
    y_forced = jax.block_until_ready(steep_relu(x_small, coeff, min_pallas_bytes=0))
    assert jnp.allclose(y_forced, ref_small, atol=1e-6, rtol=1e-6)

    # 2) 2 MiB activation: multi-block pipelined Pallas path, static coeff.
    x_big = jax.random.normal(jax.random.PRNGKey(0), (2, 16, 128, 128), dtype=jnp.float32)
    ref_big = jnp.maximum(coeff * x_big, 0.0)
    y_big = jax.block_until_ready(steep_relu(x_big, coeff))
    assert y_big.shape == x_big.shape and y_big.dtype == x_big.dtype
    assert jnp.allclose(y_big, ref_big, atol=1e-6, rtol=1e-6)

    # 2b) Traced / array coeff through the (1,)-shaped SMEM scalar.
    y_dyn = jax.block_until_ready(steep_relu(x_big, jnp.float32(coeff)))
    assert jnp.allclose(y_dyn, ref_big, atol=1e-6, rtol=1e-6)

    # 2c) In-place variant (input_output_aliases) under jit with donation.
    steep_relu_inplace = jax.jit(lambda t: steep_relu(t, coeff, donate=True),
                                 donate_argnums=0)
    y_alias = jax.block_until_ready(steep_relu_inplace(x_big))  # last use of x_big
    assert jnp.allclose(y_alias, ref_big, atol=1e-6, rtol=1e-6)

    # 3) Ragged bf16 tensor -> single fused XLA elementwise (1x HBM traffic).
    x_rag = jax.random.normal(jax.random.PRNGKey(0), (3, 5, 7), dtype=jnp.bfloat16)
    ref_rag = jnp.maximum(jnp.bfloat16(coeff) * x_rag, jnp.bfloat16(0.0))
    y_rag = jax.block_until_ready(steep_relu(x_rag, coeff))
    assert y_rag.shape == x_rag.shape and y_rag.dtype == x_rag.dtype
    assert jnp.allclose(y_rag.astype(jnp.float32), ref_rag.astype(jnp.float32),
                        atol=1e-2, rtol=1e-2)

    print("KERNEL_OK")
</pallas_src>

<mosaic_0001>
module attributes {stable_mosaic.version = 11 : i64} {
  func.func @kernel(%arg0: i32, %arg1: memref<8x256xf32, #tpu.memory_space<vmem>>, %arg2: memref<8x256xf32, #tpu.memory_space<vmem>>) attributes {dimension_semantics = [#tpu.dimension_semantics<parallel>], iteration_bounds = array<i64: 1>, scalar_prefetch = 0 : i64, scratch_operands = 0 : i64, tpu.core_type = #tpu.core_type<tc>, window_params = [{transform_indices = @transform_0, window_bounds = array<i64: 8, 256>}, {transform_indices = @transform_1, window_bounds = array<i64: 8, 256>}]} {
    %c0 = arith.constant 0 : index
    %c0_0 = arith.constant 0 : index
    %0 = vector.load %arg1[%c0, %c0_0] : memref<8x256xf32, #tpu.memory_space<vmem>>, vector<8x256xf32>
    %cst = arith.constant 3.500000e+00 : f32
    %1 = vector.broadcast %cst : f32 to vector<8x256xf32>
    %2 = arith.mulf %0, %1 : vector<8x256xf32>
    %cst_1 = arith.constant 0.000000e+00 : f32
    %3 = vector.broadcast %cst_1 : f32 to vector<8x256xf32>
    %4 = arith.maximumf %2, %3 : vector<8x256xf32>
    %c0_2 = arith.constant 0 : index
    %c0_3 = arith.constant 0 : index
    %5 = vector.load %arg2[%c0_2, %c0_3] : memref<8x256xf32, #tpu.memory_space<vmem>>, vector<8x256xf32>
    tpu.vector_store %arg2[%c0_2, %c0_3], %4 {strides = array<i32>} : memref<8x256xf32, #tpu.memory_space<vmem>>, vector<8x256xf32>,
    return
  }
  func.func @transform_0(%arg0: i32) -> (i32, i32) {
    %c0_i32 = arith.constant 0 : i32
    %c0_i32_0 = arith.constant 0 : i32
    return %arg0, %c0_i32 : i32, i32
  }
  func.func @transform_1(%arg0: i32) -> (i32, i32) {
    %c0_i32 = arith.constant 0 : i32
    %c0_i32_0 = arith.constant 0 : i32
    return %arg0, %c0_i32 : i32, i32
  }
}

</mosaic_0001>

<bundles_post_ra>
// kernel: tpu_custom_call.1
= control target key start
LH: loop header
LB: loop body
LE: loop exit
PB: predicated region body
PF: predicated region fallthrough
CT: control target
= control target key end

     0   :  { %6 = vsyncpa [#allocation3], 0  ;;  %s108_s0 = inlined_call_operand.hbm [shape: f32[8,256], index: 0, kind: input, shape index: {}]   ;;  %s109_s1 = inlined_call_operand.hbm [shape: f32[8,256], index: 1, kind: output, shape index: {}]  }
   0x1   :  { %7 = vsyncpa [#allocation4], 0  ;;  %s90_s6 = smov [#allocation2]  }
   0x2   :  { %s14_s7 = sshll.u32 %s90_s6, 4  ;;  %s15_s7 = int_to_ptr.vmem [resolvable:$true] %s14_s7 }
   0x3   :  { %s54_s8 = scalar_lea.vmem %s15_s7, 256  ;;  %p59_p1 = scmp.lt.s32.totalorder %s15_s7, %s15_s7 }
   0x4   :  { %p55_p0 = scmp.ne.s32.totalorder %s15_s7, %s54_s8  ;;  %p60_p2 = scmp.lt.s32.totalorder %s54_s8, %s54_s8 }
   0x6   :  { %p61_p3 = por %p60_p2, %p59_p1 }
   0x8   :  { %p62_p4 = pnand %p61_p3, %p55_p0 }
   0xa   :  { %65 = shalt.err (!%p62_p4)
}
   0xb   :  { %17 = dma.hbm_to_vmem [thread:$0]  %s108_s0, 256, %s15_s7, [#allocation3]  }
   0xc   :  { %86 = dma.done.wait [#allocation3], 256  }
   0xd   :  { %87 = vsyncadd [#allocation3], 4294967040  ;;  %v21_v0 = vld [vmem:[#allocation2] sm:$0xff]  ;;  %v22_v1 = vld [vmem:[#allocation2 + $0x8] sm:$0xff]  ;;  %s91_s11 = smov [#allocation5]  }
   0xe   :  { %s35_s12 = sshll.u32 %s91_s11, 4  ;;  %v23_v2 = vmul.f32 3.5, %v21_v0  ;;  %v24_v3 = vmul.f32 3.5, %v22_v1  ;;  %s36_s12 = int_to_ptr.vmem [resolvable:$true] %s35_s12 }
   0xf   :  { %s66_s13 = scalar_lea.vmem %s36_s12, 256  ;;  %p71_p6 = scmp.lt.s32.totalorder %s36_s12, %s36_s12 }
  0x10   :  { %v25_v4 = vmax.f32 %v23_v2, 0.0  ;;  %v26_v5 = vmax.f32 %v24_v3, 0.0  ;;  %p67_p5 = scmp.ne.s32.totalorder %s36_s12, %s66_s13  ;;  %p72_p7 = scmp.lt.s32.totalorder %s66_s13, %s66_s13 }
  0x12   :  { %27 = vst [vmem:[#allocation5] sm:$0xff] %v25_v4  ;;  %28 = vst [vmem:[#allocation5 + $0x8] sm:$0xff] %v26_v5  ;;  %p73_p8 = por %p72_p7, %p71_p6 }
  0x14   :  { %p74_p9 = pnand %p73_p8, %p67_p5 }
  0x16   :  { %77 = shalt.err (!%p74_p9)
}
  0x17   :  { %38 = dma.vmem_to_hbm [thread:$0]  %s36_s12, 256, %s109_s1, [#allocation4]  }
  0x18   :  { %88 = dma.done.wait [#allocation4], 256  }
  0x19   :  { %89 = vsyncadd [#allocation4], 4294967040 }
  0x1a   :  { %42 = vsyncpa [#allocation3], 1 }
  0x1b   :  { %43 = vsyncpa [#allocation4], 1 }

</bundles_post_ra>
